<compile_context>
chip_gen: v6e
topology: v6e:2x2x1
jax: 0.10.0
libtpu: 0.0.40
codegen_flags: <defaults>
</compile_context>

<pallas_src>
import functools

import jax
import jax.numpy as jnp
from jax.experimental import pallas as pl
from jax.experimental.pallas import tpu as pltpu

LANES = 128
SUBLANES = 8
MAX_BLOCK_ROWS = 1024       # 1024 x 128 x 4B = 512 KiB per stream per buffer
NUM_CORE_SPLITS = 2         # leading "parallel" grid axis (dual-TC on v7x; harmless elsewhere)


def _cdiv(a, b):
    return -(-a // b)


def _rup(a, b):
    return _cdiv(a, b) * b


def _loss_kernel(*refs, has_input, has_weight):
    """acc += [w *] (x - t)^2 elementwise; one reduce on the last inner step."""
    out_ref, acc_ref = refs[-2], refs[-1]
    data = refs[:-2]

    idx = 0
    if has_input:
        x = data[idx][...].astype(jnp.float32); idx += 1
        t = data[idx][...].astype(jnp.float32); idx += 1
        d = x - t
    else:
        # input is None  ->  gap = -target, and gap^2 == target^2
        d = data[idx][...].astype(jnp.float32); idx += 1

    sq = d * d
    if has_weight:
        sq = data[idx][...].astype(jnp.float32) * sq
        idx += 1

    k = pl.program_id(1)

    @pl.when(k == 0)
    def _():
        acc_ref[...] = jnp.zeros_like(acc_ref)

    acc_ref[...] += sq

    @pl.when(k == pl.num_programs(1) - 1)
    def _():
        # single cross-lane reduction per core, broadcast into this core's out block
        out_ref[...] = jnp.zeros_like(out_ref) + jnp.sum(acc_ref[...])


def mse_loss_scat(input_y, target_y, weights_gap, weights_l2, *,
                  max_block_rows=MAX_BLOCK_ROWS):
    """JAX wrapper mirroring MSELossScat.forward.

    input_y / target_y : [B, N, T, 2] (real/imag last dim, cplx format); input_y may
                         be None (treated as zeros, as in compute_gap).
    weights_gap        : [N] or None
    weights_l2         : [N] or None
    Returns scalar float32 loss.
    """
    tg = target_y[0, :, 0, :]            # [N, 2]
    n = tg.shape[0]
    m = 2 * n                            # flattened re/im length

    has_input = input_y is not None
    has_weight = (weights_gap is not None) or (weights_l2 is not None)
    scale = (1.0 / float(n)) if weights_l2 is None else 1.0   # .mean() vs weighted .sum()

    # Combined per-coefficient weight: (wg*gr)^2 + (wg*gi)^2 == wg^2 * (dr^2 + di^2)
    if has_weight:
        w = jnp.ones((n,), jnp.float32)
        if weights_gap is not None:
            wg = weights_gap.astype(jnp.float32)
            w = w * wg * wg
        if weights_l2 is not None:
            w = w * weights_l2.astype(jnp.float32)

    # Layout: flatten [N,2] -> [2N], zero-pad, view as (rows, 128) lanes.
    max_block_rows = max(SUBLANES, (max_block_rows // SUBLANES) * SUBLANES)
    rows_needed = _cdiv(m, LANES)
    block_rows = min(max_block_rows,
                     _rup(_cdiv(rows_needed, NUM_CORE_SPLITS), SUBLANES))
    inner = _cdiv(rows_needed, NUM_CORE_SPLITS * block_rows)
    rows_pad = NUM_CORE_SPLITS * inner * block_rows
    m_pad = rows_pad * LANES

    def to_tiles(x_flat):
        return jnp.pad(x_flat, (0, m_pad - x_flat.shape[0])).reshape(rows_pad, LANES)

    operands = []
    if has_input:
        operands.append(to_tiles(input_y[0, :, 0, :].reshape(-1)))
    operands.append(to_tiles(tg.reshape(-1)))
    if has_weight:
        operands.append(to_tiles(jnp.repeat(w, 2)))   # same weight for re and im

    data_spec = pl.BlockSpec((block_rows, LANES),
                             lambda p, k: (p * inner + k, 0))
    out_spec = pl.BlockSpec((SUBLANES, LANES), lambda p, k: (p, 0))

    partials = pl.pallas_call(
        functools.partial(_loss_kernel, has_input=has_input, has_weight=has_weight),
        out_shape=jax.ShapeDtypeStruct((NUM_CORE_SPLITS * SUBLANES, LANES), jnp.float32),
        grid=(NUM_CORE_SPLITS, inner),
        in_specs=[data_spec] * len(operands),
        out_specs=out_spec,
        scratch_shapes=[pltpu.VMEM((block_rows, LANES), jnp.float32)],
        compiler_params=pltpu.CompilerParams(
            dimension_semantics=("parallel", "arbitrary")),
    )(*operands)

    # one partial per core slab, broadcast over its (8, 128) block
    per_core = partials.reshape(NUM_CORE_SPLITS, SUBLANES, LANES)[:, 0, 0]
    return jnp.sum(per_core) * scale


def _reference(input_y, target_y, weights_gap, weights_l2):
    """Pure-JAX reference of the PyTorch forward."""
    if input_y is None:
        input_y = jnp.zeros_like(target_y)
    gap = (input_y.astype(jnp.float32) - target_y.astype(jnp.float32))[0, :, 0, :]
    if weights_gap is not None:
        gap = weights_gap.astype(jnp.float32)[:, None] * gap
    mod2 = gap[:, 0] ** 2 + gap[:, 1] ** 2
    if weights_l2 is None:
        return jnp.mean(mod2)
    return jnp.sum(weights_l2.astype(jnp.float32) * mod2)


if __name__ == "__main__":
    key = jax.random.PRNGKey(0)
    k1, k2, k3, k4 = jax.random.split(key, 4)

    B, N, T = 2, 160, 8
    input_y = jax.random.normal(k1, (B, N, T, 2), dtype=jnp.float32)
    target_y = jax.random.normal(k2, (B, N, T, 2), dtype=jnp.float32)
    weights_gap = jax.random.uniform(k3, (N,), dtype=jnp.float32)
    weights_l2 = jax.random.uniform(k4, (N,), dtype=jnp.float32)

    cases = [
        (input_y, target_y, weights_gap, weights_l2, {}),   # weighted gap + weighted l2 sum
        (input_y, target_y, None, None, {}),                # plain mean of |gap|^2
        (None, target_y, None, weights_l2, {}),             # input=None branch of compute_gap
        (input_y, target_y, weights_gap, None, {}),         # weighted gap, .mean()
    ]

    # extra case exercising the multi-step accumulation loop (small blocks, grid (2, >1))
    N2 = 2000
    k5, k6, k7 = jax.random.split(k4, 3)
    iy2 = jax.random.normal(k5, (1, N2, 4, 2), dtype=jnp.float32)
    ty2 = jax.random.normal(k6, (1, N2, 4, 2), dtype=jnp.float32)
    wl2_2 = jax.random.uniform(k7, (N2,), dtype=jnp.float32)
    cases.append((iy2, ty2, None, wl2_2, {"max_block_rows": 8}))

    for (iy, ty, wg, wl2, kw) in cases:
        loss = mse_loss_scat(iy, ty, wg, wl2, **kw)
        jax.block_until_ready(loss)
        ref = _reference(iy, ty, wg, wl2)
        assert jnp.allclose(loss, ref, rtol=1e-5, atol=1e-5), (loss, ref)

    print("KERNEL_OK")
</pallas_src>

<mosaic_0001>
module attributes {stable_mosaic.version = 11 : i64} {
  func.func @_loss_kernel(%arg0: i32, %arg1: i32, %arg2: memref<8x128xf32, #tpu.memory_space<vmem>>, %arg3: memref<8x128xf32, #tpu.memory_space<vmem>>, %arg4: memref<8x128xf32, #tpu.memory_space<vmem>>, %arg5: memref<8x128xf32, #tpu.memory_space<vmem>>, %arg6: memref<8x128xf32, #tpu.memory_space<vmem>>) attributes {dimension_semantics = [#tpu.dimension_semantics<parallel>, #tpu.dimension_semantics<arbitrary>], iteration_bounds = array<i64: 2, 1>, scalar_prefetch = 0 : i64, scratch_operands = 1 : i64, tpu.core_type = #tpu.core_type<tc>, window_params = [{transform_indices = @transform_0, window_bounds = array<i64: 8, 128>}, {transform_indices = @transform_1, window_bounds = array<i64: 8, 128>}, {transform_indices = @transform_2, window_bounds = array<i64: 8, 128>}, {transform_indices = @transform_3, window_bounds = array<i64: 8, 128>}]} {
    %c0 = arith.constant 0 : index
    %c0_0 = arith.constant 0 : index
    %0 = vector.load %arg2[%c0, %c0_0] : memref<8x128xf32, #tpu.memory_space<vmem>>, vector<8x128xf32>
    %c0_1 = arith.constant 0 : index
    %c0_2 = arith.constant 0 : index
    %1 = vector.load %arg3[%c0_1, %c0_2] : memref<8x128xf32, #tpu.memory_space<vmem>>, vector<8x128xf32>
    %2 = arith.subf %0, %1 : vector<8x128xf32>
    %3 = arith.mulf %2, %2 : vector<8x128xf32>
    %c0_3 = arith.constant 0 : index
    %c0_4 = arith.constant 0 : index
    %4 = vector.load %arg4[%c0_3, %c0_4] : memref<8x128xf32, #tpu.memory_space<vmem>>, vector<8x128xf32>
    %5 = arith.mulf %4, %3 : vector<8x128xf32>
    %c0_i32 = arith.constant 0 : i32
    %6 = arith.cmpi eq, %arg1, %c0_i32 : i32
    %7 = arith.extui %6 : i1 to i32
    %c0_i32_5 = arith.constant 0 : i32
    %8 = arith.cmpi ne, %7, %c0_i32_5 : i32
    scf.if %8 {
      %cst = arith.constant 0.000000e+00 : f32
      %15 = vector.broadcast %cst : f32 to vector<8x128xf32>
      %c0_12 = arith.constant 0 : index
      %c0_13 = arith.constant 0 : index
      %16 = vector.load %arg6[%c0_12, %c0_13] : memref<8x128xf32, #tpu.memory_space<vmem>>, vector<8x128xf32>
      tpu.vector_store %arg6[%c0_12, %c0_13], %15 {strides = array<i32>} : memref<8x128xf32, #tpu.memory_space<vmem>>, vector<8x128xf32>,
    } else {
    }
    %c0_6 = arith.constant 0 : index
    %c0_7 = arith.constant 0 : index
    %9 = vector.load %arg6[%c0_6, %c0_7] : memref<8x128xf32, #tpu.memory_space<vmem>>, vector<8x128xf32>
    %10 = arith.addf %9, %5 : vector<8x128xf32>
    %c0_8 = arith.constant 0 : index
    %c0_9 = arith.constant 0 : index
    %11 = vector.load %arg6[%c0_8, %c0_9] : memref<8x128xf32, #tpu.memory_space<vmem>>, vector<8x128xf32>
    tpu.vector_store %arg6[%c0_8, %c0_9], %10 {strides = array<i32>} : memref<8x128xf32, #tpu.memory_space<vmem>>, vector<8x128xf32>,
    %c0_i32_10 = arith.constant 0 : i32
    %12 = arith.cmpi eq, %arg1, %c0_i32_10 : i32
    %13 = arith.extui %12 : i1 to i32
    %c0_i32_11 = arith.constant 0 : i32
    %14 = arith.cmpi ne, %13, %c0_i32_11 : i32
    scf.if %14 {
      %cst = arith.constant 0.000000e+00 : f32
      %15 = vector.broadcast %cst : f32 to vector<8x128xf32>
      %c0_12 = arith.constant 0 : index
      %c0_13 = arith.constant 0 : index
      %16 = vector.load %arg6[%c0_12, %c0_13] : memref<8x128xf32, #tpu.memory_space<vmem>>, vector<8x128xf32>
      %17 = vector.shape_cast %16 : vector<8x128xf32> to vector<1x8x128xf32>
      %cst_14 = arith.constant dense<0.000000e+00> : vector<1xf32>
      %18 = vector.multi_reduction <add>, %17, %cst_14 [1, 2] : vector<1x8x128xf32> to vector<1xf32>
      %19 = vector.shape_cast %18 : vector<1xf32> to vector<1x1x1xf32>
      %20 = vector.extract %19[0, 0, 0] : f32 from vector<1x1x1xf32>
      %21 = vector.broadcast %20 : f32 to vector<8x128xf32>
      %22 = arith.addf %15, %21 : vector<8x128xf32>
      %c0_15 = arith.constant 0 : index
      %c0_16 = arith.constant 0 : index
      %23 = vector.load %arg5[%c0_15, %c0_16] : memref<8x128xf32, #tpu.memory_space<vmem>>, vector<8x128xf32>
      tpu.vector_store %arg5[%c0_15, %c0_16], %22 {strides = array<i32>} : memref<8x128xf32, #tpu.memory_space<vmem>>, vector<8x128xf32>,
    } else {
    }
    return
  }
  func.func @transform_0(%arg0: i32, %arg1: i32) -> (i32, i32) {
    %c1_i32 = arith.constant 1 : i32
    %0 = arith.muli %arg0, %c1_i32 : i32
    %1 = arith.addi %0, %arg1 : i32
    %c0_i32 = arith.constant 0 : i32
    %c0_i32_0 = arith.constant 0 : i32
    return %1, %c0_i32 : i32, i32
  }
  func.func @transform_1(%arg0: i32, %arg1: i32) -> (i32, i32) {
    %c1_i32 = arith.constant 1 : i32
    %0 = arith.muli %arg0, %c1_i32 : i32
    %1 = arith.addi %0, %arg1 : i32
    %c0_i32 = arith.constant 0 : i32
    %c0_i32_0 = arith.constant 0 : i32
    return %1, %c0_i32 : i32, i32
  }
  func.func @transform_2(%arg0: i32, %arg1: i32) -> (i32, i32) {
    %c1_i32 = arith.constant 1 : i32
    %0 = arith.muli %arg0, %c1_i32 : i32
    %1 = arith.addi %0, %arg1 : i32
    %c0_i32 = arith.constant 0 : i32
    %c0_i32_0 = arith.constant 0 : i32
    return %1, %c0_i32 : i32, i32
  }
  func.func @transform_3(%arg0: i32, %arg1: i32) -> (i32, i32) {
    %c0_i32 = arith.constant 0 : i32
    %c0_i32_0 = arith.constant 0 : i32
    return %arg0, %c0_i32 : i32, i32
  }
}

</mosaic_0001>

<bundles_post_ra>
// kernel: tpu_custom_call.1
= control target key start
LH: loop header
LB: loop body
LE: loop exit
PB: predicated region body
PF: predicated region fallthrough
CT: control target
= control target key end

     0   :  { %s940_s0 = inlined_call_operand.hbm [shape: f32[16,128], index: 0, kind: input, shape index: {}]   ;;  %s941_s1 = inlined_call_operand.hbm [shape: f32[16,128], index: 1, kind: input, shape index: {}]   ;;  %s942_s2 = inlined_call_operand.hbm [shape: f32[16,128], index: 2, kind: input, shape index: {}]   ;;  %s943_s3 = inlined_call_operand.hbm [shape: f32[16,128], index: 3, kind: output, shape index: {}]  }
   0x1   :  { %947 = sst [smem:[#allocation15_spill]] %s941_s1 }
   0x2   :  { %8 = vsyncpa [#allocation4], 0 }
   0x3   :  { %10 = vsyncpa [#allocation4 + $0x1], 0 }
   0x4   :  { %11 = vsyncpa [#allocation7], 0 }
   0x5   :  { %13 = vsyncpa [#allocation7 + $0x1], 0 }
   0x6   :  { %14 = vsyncpa [#allocation5], 0 }
   0x7   :  { %16 = vsyncpa [#allocation5 + $0x1], 0  ;;  %s736_s12 = smov 0   ;;  %s738_s13 = smov 0  }
   0x8   :  { %s740_s14 = smov 0   ;;  %s742_s15 = smov 0  }
   0x9   :  { %s744_s16 = smov 0   ;;  %s746_s17 = smov 0  }
   0xa LB: > { %948 = sst [smem:[#allocation13_spill]] %s706_s16  ;;  %s767_s18 = sadd.s32 4294967295, %s710_s17   ;;  %s710_s17 = sphi %s746_s17, %s22_s17   ;;  %s706_s16 = sphi %s744_s16, %s960_s16   ;;  %s702_s15 = sphi %s742_s15, %s959_s15   ;;  %s698_s14 = sphi %s740_s14, %s963_s14   ;;  %s694_s13 = sphi %s738_s13, %s962_s13   ;;  %s690_s12 = sphi %s736_s12, %s961_s12  }
   0xb   : > { %s450_s19 = sadd.s32 4294967294, %s710_s17   ;;  %s34_s20 = sadd.s32 1, %s706_s16 }
   0xc   : > { %s43_s21 = sadd.s32 1, %s698_s14  ;;  %p36_p0 = scmp.ge.s32.totalorder %s34_s20, 2 }
   0xd   : > { %p50_p1 = scmp.ne.s32.totalorder %s698_s14, %s694_s13  ;;  %p51_p2 = scmp.eq.s32.totalorder %s710_s17, 0 }
   0xe   : > { %p56_p3 = scmp.ne.s32.totalorder %s694_s13, %s690_s12  ;;  %s965_s20 = smov (%p36_p0, %s34_s20), 0 }
   0xf   : > { %949 = sst [smem:[#allocation14_spill]] %s965_s20  ;;  %p779_p4 = por %p51_p2, %p50_p1 }
  0x10   : > { %p57_p5 = scmp.eq.s32.totalorder %s767_s18, 0  ;;  %s40_s23 = ssub.s32 %s706_s16, %s965_s20 }
  0x11   : > { %p136_p6 = scmp.eq.s32.totalorder %s767_s18, 1  ;;  %p41_p7 = scmp.eq.s32.totalorder %s40_s23, 0 }
  0x12   : > { %p787_p8 = por %p57_p5, %p56_p3  ;;  %p142_p10 = scmp.eq.s32.totalorder %s450_s19, 1 }
  0x13   : > { %p791_p9 = por %p136_p6, %p50_p1  ;;  %p492_p13 = scmp.lt.s32.totalorder %s710_s17, 2 }
  0x14   : > { %s796_s26 = scalar_select %p41_p7, %s698_s14, %s43_s21  }
  0x15   : > { %p798_p11 = por %p142_p10, %p56_p3  ;;  %s944_s28 = sand.u32 1, %s698_s14  }
  0x16   : > { %s807_s29 = sshll.u32 %s944_s28, 3  ;;  %s810_s30 = sshll.u32 %s706_s16, 7 }
  0x17   : > { %p814_p0 = pnand %p492_p13, %p779_p4  ;;  %s181_s5 = sand.u32 1, %s710_s17  }
  0x18   : > { %s955_s1 = sld [smem:[#allocation15_spill]]  ;;  %s185_s9 = scalar_lea.vmem [#allocation6], %s807_s29 }
  0x19   : > { %s193_s10 = sshll.u32 %s185_s9, 4  ;;  %p459_p1 = scmp.ge.s32.totalorder %s710_s17, 1  ;;  %s194_s10 = int_to_ptr.vmem [resolvable:$true] %s193_s10 }
  0x1a   : > { %p217_p2 = scmp.lt.s32.totalorder %s710_s17, 3  ;;  %s826_s11 = scalar_lea.sflag [#allocation7], %s181_s5 }
  0x1b   : > { %p544_p3 = pneg %p814_p0  ;;  %s555_s19 = scalar_lea.vmem %s194_s10, 128 }
  0x1c   : > { %p556_p4 = scmp.ne.s32.totalorder %s194_s10, %s555_s19  ;;  %s712_s21 = smov [#allocation6]  }
  0x1d   : > { %s560_s22 = sshll.u32 %s712_s21, 4  ;;  %s561_s22 = int_to_ptr.vmem [resolvable:$false] %s560_s22 }
  0x1e   : > { %s191_s8 = scalar_lea.hbm %s955_s1, %s810_s30  ;;  %p558_p5 = pnand %p556_p4, %p544_p3 }
  0x1f   : > { %s562_s23 = scalar_lea.vmem %s561_s22, 256  ;;  %p563_p7 = scmp.lt.s32.totalorder %s194_s10, %s561_s22 }
  0x20   : > { %p559_p6 = pneg %p558_p5  ;;  %p564_p10 = scmp.lt.s32.totalorder %s562_s23, %s555_s19 }
  0x22   : > { %p565_p13 = por %p564_p10, %p563_p7 }
  0x24   : > { %p566_p12 = pnand %p565_p13, %p559_p6 }
  0x26   : > { %569 = shalt.err (!%p566_p12)
}
  0x27   : > { %484 = dma.hbm_to_vmem [thread:$0]  (!%p814_p0), %s191_s8, 128, %s194_s10, %s826_s11  }
  0x28   : > { %p840_p4 = pnand %p459_p1, %p217_p2  ;;  %s172_s9 = scalar_lea.hbm %s940_s0, %s810_s30 }
  0x29   : > { %s166_s19 = scalar_lea.vmem [#allocation3], %s807_s29  ;;  %s210_s28 = scalar_lea.hbm %s942_s2, %s810_s30 }
  0x2a   : > { %s174_s21 = sshll.u32 %s166_s19, 4  ;;  %s957_s1 = sand.u32 1, %s698_s14   ;;  %s175_s21 = int_to_ptr.vmem [resolvable:$true] %s174_s21 }
  0x2b   : > { %s163_s20 = scalar_lea.sflag [#allocation4], %s957_s1  ;;  %s583_s8 = scalar_lea.vmem %s175_s21, 128 }
  0x2c   : > { %p584_p12 = scmp.ne.s32.totalorder %s175_s21, %s583_s8  ;;  %s713_s10 = smov [#allocation3]  }
  0x2d   : > { %s588_s16 = sshll.u32 %s713_s10, 4  ;;  %s589_s16 = int_to_ptr.vmem [resolvable:$false] %s588_s16 }
  0x2e   : > { %p586_p1 = pnand %p584_p12, %p544_p3  ;;  %s590_s6 = scalar_lea.vmem %s589_s16, 256 }
  0x2f   : > { %p591_p5 = scmp.lt.s32.totalorder %s175_s21, %s589_s16  ;;  %p592_p6 = scmp.lt.s32.totalorder %s590_s6, %s583_s8 }
  0x30   : > { %p587_p2 = pneg %p586_p1 }
  0x31   : > { %p593_p7 = por %p592_p6, %p591_p5 }
  0x33   : > { %p594_p10 = pnand %p593_p7, %p587_p2 }
  0x35   : > { %597 = shalt.err (!%p594_p10)
}
  0x36   : > { %481 = dma.hbm_to_vmem [thread:$0]  (!%p814_p0), %s172_s9, 128, %s175_s21, %s163_s20  }
  0x37   : > { %s204_s1 = scalar_lea.vmem [#allocation8], %s807_s29  ;;  %s714_s22 = smov [#allocation8]  }
  0x38   : > { %s212_s7 = sshll.u32 %s204_s1, 4  ;;  %s616_s16 = sshll.u32 %s714_s22, 4  ;;  %s213_s7 = int_to_ptr.vmem [resolvable:$true] %s212_s7  ;;  %s617_s16 = int_to_ptr.vmem [resolvable:$false] %s616_s16 }
  0x39   : > { %s611_s19 = scalar_lea.vmem %s213_s7, 128  ;;  %s618_s23 = scalar_lea.vmem %s617_s16, 256 }
  0x3a   : > { %p612_p13 = scmp.ne.s32.totalorder %s213_s7, %s611_s19  ;;  %p619_p2 = scmp.lt.s32.totalorder %s213_s7, %s617_s16 }
  0x3b   : > { %p620_p5 = scmp.lt.s32.totalorder %s618_s23, %s611_s19 }
  0x3c   : > { %p614_p12 = pnand %p612_p13, %p544_p3 }
  0x3d   : > { %p621_p6 = por %p620_p5, %p619_p2 }
  0x3e   : > { %p615_p1 = pneg %p614_p12 }
  0x40   : > { %p622_p7 = pnand %p621_p6, %p615_p1 }
  0x42   : > { %625 = shalt.err (!%p622_p7)
}
  0x43   : > { %487 = dma.hbm_to_vmem [thread:$0]  (!%p814_p0), %s210_s28, 128, %s213_s7, %s826_s11  }
  0x44   : > { %221 = sbr.rel (%p840_p4) target bundleno = 298 (0x12a), region = 32  ;;  %s875_s9 = sand.u32 (!%p840_p4), 1, %s694_s13  }
  0x45   : > { %s878_s21 = sshll.u32 (!%p840_p4), %s875_s9, 3  ;;  %s224_s4 = scalar_lea.sflag (!%p840_p4), [#allocation4], %s875_s9 }
  0x46   : > { %s227_s8 = scalar_lea.vmem (!%p840_p4), [#allocation3], %s878_s21 }
  0x49   : > { %677 = dma.done.wait (%p787_p8), %s224_s4, 128  }
  0x4a   : > { %679 = vsyncadd (%p787_p8), %s224_s4, 4294967168  ;;  %s232_s28 = sand.u32 1, %s767_s18   ;;  %s236_s11 = scalar_lea.vmem [#allocation6], %s878_s21 }
  0x4b   : > { %s233_s30 = scalar_lea.sflag [#allocation7], %s232_s28 }
  0x4c   : > { %681 = dma.done.wait (%p787_p8), %s233_s30, 256  }
  0x4d   : > { %683 = vsyncadd (%p787_p8), %s233_s30, 4294967040  ;;  %v281_v0 = vld [vmem:[%s227_s8] sm:$0xff]  ;;  %v282_v1 = vld [vmem:[%s236_s11] sm:$0xff]  ;;  %s245_s5 = scalar_lea.vmem [#allocation8], %s878_s21  ;;  %s277_s18 = scalar_lea.vmem [#allocation9], %s878_s21 }
  0x4e   : > { %v283_v2 = vsub.f32 %v281_v0, %v282_v1  ;;  %v285_v3 = vld [vmem:[%s245_s5] sm:$0xff]  ;;  %s325_s24 = sshll.u32 %s277_s18, 4  ;;  %s465_s10 = sshll.u32 %s702_s15, 7  ;;  %s895_s24 = int_to_ptr.vmem [resolvable:$true] %s325_s24 }
  0x4f   : > { %s323_s19 = scalar_lea.hbm %s943_s3, %s465_s10  ;;  %s312_s22 = scalar_lea.sflag [#allocation5], %s875_s9 }
  0x50   : > { %v284_v4 = vmul.f32 %v283_v2, %v283_v2  ;;  %s626_s16 = scalar_lea.vmem %s895_s24, 128  ;;  %s715_s23 = smov [#allocation9]  }
  0x51   : > { %p627_p8 = scmp.ne.s32.totalorder %s895_s24, %s626_s16  ;;  %s630_s15 = sshll.u32 %s715_s23, 4  ;;  %s631_s15 = int_to_ptr.vmem [resolvable:$false] %s630_s15 }
  0x52   : > { %v286_v5 = vmul.f32 %v285_v3, %v284_v4  ;;  %s632_s20 = scalar_lea.vmem %s631_s15, 256  ;;  %p633_p4 = scmp.lt.s32.totalorder %s895_s24, %s631_s15 }
  0x53   : > { %p628_p0 = pnand %p627_p8, %p791_p9  ;;  %p634_p10 = scmp.lt.s32.totalorder %s632_s20, %s626_s16 }
  0x54   : > { %299 = vadd.xlane.f32.xlu0 %v286_v5 }
  0x55   : > { %p629_p3 = pneg %p628_p0  ;;  %p635_p13 = por %p634_p10, %p633_p4 }
  0x57   : > { %p636_p12 = pnand %p635_p13, %p629_p3 }
  0xdd   : > { %v300_v6 = vpop.xlane.xlu0 %299 }
  0xde   : > { %v301_v7 = vrot.slane %v300_v6, 4 }
  0xe0   : > { %v302_v8 = vadd.f32 %v301_v7, %v300_v6 }
  0xe2   : > { %v303_v9 = vrot.slane %v302_v8, 2 }
  0xe4   : > { %v304_v10 = vadd.f32 %v303_v9, %v302_v8 }
  0xe6   : > { %v305_v11 = vrot.slane %v304_v10, 1 }
  0xe8   : > { %v306_v12 = vadd.f32 %v305_v11, %v304_v10 }
  0xea   : > { %468 = vpush %v306_v12 }
 0x11b   : > { %s469_s6 = spop %468 }
 0x11c   : > { %v308_v13 = vstv %s469_s6 }
 0x11d   : > { %310 = vst [vmem:[%s277_s18] sm:$0xff] %v308_v13 }
 0x11e   : > { %639 = shalt.err (!%p636_p12)
}
 0x11f   : > { %s640_s29 = scalar_lea.hbm %s323_s19, 128  ;;  %s644_s4 = scalar_lea.hbm %s943_s3, 256 }
 0x120   : > { %p641_p1 = scmp.ne.s32.totalorder %s323_s19, %s640_s29  ;;  %p645_p6 = scmp.lt.s32.totalorder %s323_s19, %s943_s3 }
 0x121   : > { %p646_p7 = scmp.lt.s32.totalorder %s644_s4, %s640_s29 }
 0x122   : > { %p642_p2 = pnand %p641_p1, %p791_p9 }
 0x123   : > { %p647_p8 = por %p646_p7, %p645_p6 }
 0x124   : > { %p643_p5 = pneg %p642_p2 }
 0x126   : > { %p648_p0 = pnand %p647_p8, %p643_p5 }
 0x128   : > { %651 = shalt.err (!%p648_p0)
}
 0x129   : > { %476 = dma.vmem_to_hbm [thread:$0]  (%p791_p9), %s895_s24, 128, %s323_s19, %s312_s22  }
 0x12a PF: > { %s337_s30 = sand.u32 1, %s690_s12   ;;  %p958_p3 = scmp.ge.s32.totalorder %s710_s17, 2 }
 0x12b   : > { %s338_s11 = scalar_lea.sflag [#allocation5], %s337_s30 }
 0x12c   : > { %p489_p4 = pnand %p958_p3, %p798_p11 }
 0x12e   : > { %p490_p10 = pneg %p489_p4 }
 0x130   : > { %685 = dma.done.wait (%p490_p10), %s338_s11, 128  }
 0x131   : > { %687 = vsyncadd (%p490_p10), %s338_s11, 4294967168  ;;  %s22_s17 = sadd.s32 1, %s710_s17   ;;  %s959_s15 = sld [smem:[#allocation13_spill]] }
 0x132   : > { %p19_p13 = scmp.ge.s32.totalorder %s22_s17, 4   ;;  %s960_s16 = sld [smem:[#allocation14_spill]] }
 0x133   : > { %s961_s12 = smov %s694_s13  ;;  %s962_s13 = smov %s698_s14 }
 0x134   : > { %s963_s14 = smov %s796_s26  ;;  %21 = sbr.rel (!%p19_p13) target bundleno = 10 (0xa), region = 109 }
 0x139   :  { %343 = vsyncpa [#allocation4], 1 }
 0x13a   :  { %345 = vsyncpa [#allocation4 + $0x1], 1 }
 0x13b   :  { %346 = vsyncpa [#allocation7], 1 }
 0x13c   :  { %348 = vsyncpa [#allocation7 + $0x1], 1 }
 0x13d   :  { %349 = vsyncpa [#allocation5], 1 }
 0x13e   :  { %351 = vsyncpa [#allocation5 + $0x1], 1 }

</bundles_post_ra>
